<compile_context>
chip_gen: v5e
topology: v5e:2x2
jax: 0.10.0
libtpu: 0.0.40
codegen_flags: <defaults>
</compile_context>

<pallas_src>
import jax
import jax.numpy as jnp
from jax.experimental import pallas as pl
from jax.experimental.pallas import tpu as pltpu

_LANE = 128
_TARGET_TILE_BYTES = 4 * 1024 * 1024  # <= ~4 MiB/tile stays safe on v7x's 64 MiB VMEM


def _identity_kernel(x_ref, o_ref):
    # The entire forward pass of ParameterModule: return x unchanged.
    o_ref[...] = x_ref[...]


def _sublane_pack(dtype) -> int:
    # Sub-32-bit dtypes pack along sublanes: 8 rows for 4-byte dtypes,
    # 16 for 2-byte (bf16), 32 for 1-byte (int8/fp8).
    return max(8, 32 // max(jnp.dtype(dtype).itemsize, 1))


def _ceil_to(v: int, m: int) -> int:
    return -(-v // m) * m


def _pick_cols(n: int, pack: int):
    """Widest lane count (multiple of 128) dividing n, preferring enough rows
    for (pack, 128)-aligned blocks and >= 2 grid steps."""
    candidates = (4096, 2048, 1024, 512, 256, 128)
    for want_rows in (2 * pack, pack, 1):
        for c in candidates:
            if n % c == 0 and (n // c) >= want_rows:
                return c
    return None


def _identity_copy_2d(x2d: jax.Array) -> jax.Array:
    rows, cols = x2d.shape
    pack = _sublane_pack(x2d.dtype)
    itemsize = jnp.dtype(x2d.dtype).itemsize

    if rows <= pack:
        # Tiny array: a single full-extent block (allowed: equals array dims).
        tile_rows = rows
    else:
        rows_ceil = _ceil_to(rows, pack)
        # ~4 MiB tiles, rounded to the sublane-packing multiple; last partial
        # block is handled by cdiv gridding + masked writes (no divisor search).
        tile_rows = max(pack, (_TARGET_TILE_BYTES // (cols * itemsize)) // pack * pack)
        tile_rows = min(tile_rows, rows_ceil)
        if tile_rows >= rows:
            # Split into >= 2 grid steps so v7x's two TensorCores both get work
            # (extra steps are only a cheap loop on single-TC v5e/v6e).
            tile_rows = min(rows_ceil, _ceil_to(-(-rows // 2), pack))
    grid = (pl.cdiv(rows, tile_rows),)

    return pl.pallas_call(
        _identity_kernel,
        out_shape=jax.ShapeDtypeStruct((rows, cols), x2d.dtype),
        grid_spec=pltpu.PrefetchScalarGridSpec(
            num_scalar_prefetch=0,
            grid=grid,
            in_specs=[pl.BlockSpec((tile_rows, cols), lambda i: (i, 0))],
            out_specs=pl.BlockSpec((tile_rows, cols), lambda i: (i, 0)),
        ),
        # Identity: let the output reuse the input buffer; with a donated input
        # under jit XLA can elide the copy entirely.
        input_output_aliases={0: 0},
        compiler_params=pltpu.CompilerParams(
            dimension_semantics=("parallel",),
            # Double-buffered ~4 MiB input + output tiles: explicit limit avoids
            # v5e's 16 MiB scoped default and stays within v7x's 64 MiB VMEM.
            vmem_limit_bytes=32 * 1024 * 1024,
        ),
    )(x2d)


def parameter_module_forward(x: jax.Array, p: jax.Array) -> jax.Array:
    """Pallas implementation of ParameterModule(p).forward(x).

    `p` is the registered parameter; it is intentionally unused in the forward
    pass, exactly matching the PyTorch semantics.
    """
    del p  # registered but unused in forward

    orig_shape = x.shape
    n = x.size
    if n == 0:
        return x

    pack = _sublane_pack(x.dtype)
    flat = x.reshape(-1)
    cols = _pick_cols(n, pack)

    if cols is not None:
        # Fast path: zero padding — a pure reshape (layout plumbing only; fuses
        # away under jit) into a lane-dense 2D slab, kernel, reshape back.
        return _identity_copy_2d(flat.reshape(n // cols, cols)).reshape(orig_shape)

    # Ragged fallback (n not a multiple of 128): pad only to the next lane
    # multiple, copy, slice back.
    # TODO(synk): handle the ragged tail with a masked last block instead of a
    # pad/slice round trip if this path ever becomes hot.
    n_pad = _ceil_to(n, _LANE)
    flat_padded = jnp.pad(flat, (0, n_pad - n))
    out2d = _identity_copy_2d(flat_padded.reshape(n_pad // _LANE, _LANE))
    return out2d.reshape(-1)[:n].reshape(orig_shape)


if __name__ == "__main__":
    key = jax.random.PRNGKey(0)
    kx, kp = jax.random.split(key)

    # Small NCHW input, matching a typical conv-style tensor.
    x = jax.random.normal(kx, (2, 4, 16, 16), dtype=jnp.float32)

    # Lone registered parameter (shape arbitrary; unused in forward).
    p = jax.random.normal(kp, (32,), dtype=jnp.float32)

    fwd = jax.jit(parameter_module_forward)
    y = jax.block_until_ready(fwd(x, p))

    assert y.shape == x.shape and y.dtype == x.dtype
    assert bool(jnp.all(y == x))
    print("KERNEL_OK")
</pallas_src>

<mosaic_0001>
module attributes {stable_mosaic.version = 11 : i64} {
  func.func @_identity_kernel(%arg0: i32, %arg1: memref<8x128xf32, #tpu.memory_space<vmem>>, %arg2: memref<8x128xf32, #tpu.memory_space<vmem>>) attributes {dimension_semantics = [#tpu.dimension_semantics<parallel>], iteration_bounds = array<i64: 2>, scalar_prefetch = 0 : i64, scratch_operands = 0 : i64, tpu.core_type = #tpu.core_type<tc>, window_params = [{transform_indices = @transform_0, window_bounds = array<i64: 8, 128>}, {transform_indices = @transform_1, window_bounds = array<i64: 8, 128>}]} {
    %c0 = arith.constant 0 : index
    %c0_0 = arith.constant 0 : index
    %0 = vector.load %arg1[%c0, %c0_0] : memref<8x128xf32, #tpu.memory_space<vmem>>, vector<8x128xf32>
    %c0_1 = arith.constant 0 : index
    %c0_2 = arith.constant 0 : index
    %1 = vector.load %arg2[%c0_1, %c0_2] : memref<8x128xf32, #tpu.memory_space<vmem>>, vector<8x128xf32>
    tpu.vector_store %arg2[%c0_1, %c0_2], %0 {strides = array<i32>} : memref<8x128xf32, #tpu.memory_space<vmem>>, vector<8x128xf32>,
    return
  }
  func.func @transform_0(%arg0: i32) -> (i32, i32) {
    %c0_i32 = arith.constant 0 : i32
    %c0_i32_0 = arith.constant 0 : i32
    return %arg0, %c0_i32 : i32, i32
  }
  func.func @transform_1(%arg0: i32) -> (i32, i32) {
    %c0_i32 = arith.constant 0 : i32
    %c0_i32_0 = arith.constant 0 : i32
    return %arg0, %c0_i32 : i32, i32
  }
}

</mosaic_0001>

<bundles_post_ra>
// kernel: parameter_module_forward.1
= control target key start
LH: loop header
LB: loop body
LE: loop exit
PB: predicated region body
PF: predicated region fallthrough
CT: control target
= control target key end

     0   :  { %s188_s6 = smov 0   ;;  %s208_s0 = inlined_call_operand.vmem [shape: f32[16,128], index: 0, kind: input, shape index: {}, may-alias: {0,1}]   ;;  %s209_s1 = inlined_call_operand.vmem [shape: f32[16,128], index: 1, kind: output, shape index: {}, may-alias: {0,1}]  }
   0x1 LB: > { %s167_s7 = sadd.s32 4294967295, %s190_s6   ;;  %p171_p0 = scmp.ge.s32.totalorder %s190_s6, 1  ;;  %s190_s6 = sphi %s188_s6, %s11_s6  }
   0x2   : > { %p86_p1 = scmp.lt.s32.totalorder %s190_s6, 3 }
   0x4   : > { %p87_p2 = pnand %p171_p0, %p86_p1 }
   0x5   : > { %p104_p3 = scmp.lt.s32.totalorder (!%p87_p2), %s167_s7, 1 }
   0x6   : > { %90 = sbr.rel (%p87_p2) target bundleno = 16 (0x10), region = 24 }
   0xb   : > { %s211_s7 = smov (!%p104_p3, %s167_s7), 1 }
   0xc   : > { %s172_s8 = sshll.u32 %s211_s7, 3 }
   0xd   : > { %s107_s11 = scalar_lea.vmem %s208_s0, %s172_s8  ;;  %s111_s14 = scalar_lea.vmem %s209_s1, %s172_s8 }
   0xe   : > { %v112_v0 = vld [vmem:[%s107_s11] sm:$0xff] }
   0xf   : > { %113 = vst [vmem:[%s111_s14] sm:$0xff] %v112_v0 }
  0x10 PF: > { %s11_s6 = sadd.s32 1, %s190_s6  }
  0x11   : > { %p8_p4 = scmp.ge.s32.totalorder %s11_s6, 4  }
  0x13   :  { %10 = sbr.rel (!%p8_p4) target bundleno = 1 (0x1), region = 54 }

</bundles_post_ra>
